<compile_context>
chip_gen: v5e
topology: v5e:2x2
jax: 0.10.0
libtpu: 0.0.40
codegen_flags: <defaults>
</compile_context>

<pallas_src>
import functools
from typing import NamedTuple

import jax
import jax.numpy as jnp
from jax.experimental import pallas as pl
from jax.experimental.pallas import tpu as pltpu


class _TpuConfig(NamedTuple):
    vmem_limit: int        # scoped VMEM budget requested from Mosaic
    fused_max_bytes: int   # max f32 slab size for the single fused kernel
    tile_bytes: int        # target block size for the tiled two-pass path
    num_cores: int         # TensorCores to split the pass-1 reduction across


@functools.lru_cache(maxsize=1)
def _tpu_config() -> _TpuConfig:
    """Generation-aware sizing (v7x: 64 MiB VMEM / 2 TCs, v5e/v6e: 128 MiB)."""
    kind = ""
    try:
        kind = jax.devices()[0].device_kind.lower()
    except Exception:
        pass
    vmem_cap = None
    try:
        vmem_cap = getattr(pltpu.get_tpu_info(), "vmem_capacity_bytes", None)
    except Exception:
        vmem_cap = None
    if not vmem_cap:
        if "v7" in kind or "7x" in kind:
            vmem_cap = 64 << 20          # v7x: 64 MiB per TensorCore
        elif "v2" in kind or "v3" in kind:
            vmem_cap = 16 << 20
        else:
            vmem_cap = 128 << 20         # v4 / v5e / v5p / v6e
    two_tc = ("v7" in kind) or ("7x" in kind) or ("v4" in kind)
    vmem_limit = min((vmem_cap * 3) // 4, 96 << 20)   # 96 MiB on 128-MiB parts, 48 on v7x
    tile_bytes = max(1 << 20, min(8 << 20, vmem_limit // 12))
    fused_max_bytes = max(2 << 20, vmem_limit // 6)   # in + out + f32 temps, w/ headroom
    return _TpuConfig(vmem_limit, fused_max_bytes, tile_bytes, 2 if two_tc else 1)


def _fused_kernel(x_ref, o_ref, *, inv_n):
    """Whole slab resident in VMEM: sum, mean and subtract in one launch."""
    x = x_ref[...].astype(jnp.float32)
    mean = jnp.sum(x) * jnp.float32(inv_n)
    o_ref[...] = (x - mean).astype(o_ref.dtype)


def _partial_sum_kernel(x_ref, part_ref, *, block_rows, tiles_per_core,
                        total_rows, needs_mask):
    """Pass 1: per-core scalar partial sums into a resident (1, 1) block."""
    c = pl.program_id(0)
    i = pl.program_id(1)

    @pl.when(i == 0)
    def _():
        part_ref[...] = jnp.zeros_like(part_ref)

    if not needs_mask:
        # Statically known: every block is fully in bounds — no mask anywhere.
        part_ref[...] += jnp.sum(x_ref[...].astype(jnp.float32))
        return

    row0 = (c * tiles_per_core + i) * block_rows

    @pl.when(row0 + block_rows <= total_rows)
    def _():
        # Interior tile: unmasked fast path (no iota / compare / select).
        part_ref[...] += jnp.sum(x_ref[...].astype(jnp.float32))

    @pl.when(jnp.logical_and(row0 < total_rows, row0 + block_rows > total_rows))
    def _():
        # Ragged last tile: zero leading-dim rows past the end of the array.
        x = x_ref[...].astype(jnp.float32)
        rid = row0 + jax.lax.broadcasted_iota(jnp.int32, x.shape, 0)
        part_ref[...] += jnp.sum(jnp.where(rid < total_rows, x, 0.0))
    # row0 >= total_rows: phantom tile from an uneven core split -> contributes 0.


def _center_kernel(part_ref, x_ref, o_ref, *, inv_n):
    """Pass 2: mean from the tiny (<=2,1,1) partials, subtract in f32."""
    mean = jnp.sum(part_ref[...]) * jnp.float32(inv_n)
    o_ref[...] = (x_ref[...].astype(jnp.float32) - mean).astype(o_ref.dtype)


def centered_layer(x):
    """X - X.mean(); reduction and centering done in Pallas (float dtypes)."""
    orig_shape = x.shape
    orig_dtype = x.dtype
    n = x.size
    if n == 0:
        return x
    inv_n = 1.0 / float(n)
    cfg = _tpu_config()

    # Layout-preserving 3-D view: merge only the major dims, keep the tiled
    # (second-minor, minor) dims intact -> no relayout copy, no padding.
    if x.ndim >= 2:
        view = x.reshape(-1, orig_shape[-2], orig_shape[-1])
    else:
        view = x.reshape(1, 1, -1)       # rank-0/1 corner case (tiny)
    L, S2, S1 = view.shape
    slice_bytes = S2 * S1 * 4

    # If a single (S2, S1) slice exceeds the tile budget, fold groups of 8
    # sublanes into the leading dim (layout-preserving when S2 % 8 == 0) so the
    # leading-dim tiling below still yields ~tile_bytes blocks.
    if slice_bytes > cfg.tile_bytes and S2 % 8 == 0 and S2 > 8:
        view = view.reshape(L * (S2 // 8), 8, S1)
        L, S2, S1 = view.shape
        slice_bytes = S2 * S1 * 4
    if slice_bytes > cfg.vmem_limit // 4:
        # TODO(synk): degenerate trailing dims (> VMEM/4 per slice with S2 not a
        # multiple of 8) would need 2-D in-kernel tiling; fall back to XLA here.
        xf = x.astype(jnp.float32)
        return (xf - jnp.mean(xf)).astype(orig_dtype)

    if n * 4 <= cfg.fused_max_bytes:
        # ---- Fused single-launch path: whole slab VMEM-resident (2N bytes). ----
        out3 = pl.pallas_call(
            functools.partial(_fused_kernel, inv_n=inv_n),
            out_shape=jax.ShapeDtypeStruct(view.shape, orig_dtype),
            grid=(1,),
            in_specs=[pl.BlockSpec((L, S2, S1), lambda i: (0, 0, 0))],
            out_specs=pl.BlockSpec((L, S2, S1), lambda i: (0, 0, 0)),
            compiler_params=pltpu.CompilerParams(
                dimension_semantics=("arbitrary",),
                vmem_limit_bytes=cfg.vmem_limit),
        )(view)
    else:
        # ---- Tiled two-pass path (3N bytes total HBM traffic). ----
        block_rows = max(1, min(L, cfg.tile_bytes // slice_bytes))
        total_tiles = pl.cdiv(L, block_rows)
        num_cores = max(1, min(cfg.num_cores, total_tiles))
        tiles_per_core = pl.cdiv(total_tiles, num_cores)
        needs_mask = (num_cores * tiles_per_core * block_rows) != L
        needs_clamp = (num_cores * tiles_per_core) != total_tiles

        if needs_clamp:
            def x_map(c, i):
                # Clamp so the phantom step of an uneven core split never maps a
                # fully out-of-bounds block; its data is skipped in the kernel.
                return (jnp.minimum(c * tiles_per_core + i, total_tiles - 1), 0, 0)
        else:
            def x_map(c, i):
                return (c * tiles_per_core + i, 0, 0)

        # Pass 1: per-core scalar partial sums (leading axis "parallel" so a
        # 2-TC part shards the reduction; harmless / skipped on 1-TC chips).
        partials = pl.pallas_call(
            functools.partial(_partial_sum_kernel,
                              block_rows=block_rows,
                              tiles_per_core=tiles_per_core,
                              total_rows=L,
                              needs_mask=needs_mask),
            out_shape=jax.ShapeDtypeStruct((num_cores, 1, 1), jnp.float32),
            grid=(num_cores, tiles_per_core),
            in_specs=[pl.BlockSpec((block_rows, S2, S1), x_map)],
            out_specs=pl.BlockSpec((None, 1, 1), lambda c, i: (c, 0, 0)),
            compiler_params=pltpu.CompilerParams(
                dimension_semantics=("parallel", "arbitrary"),
                vmem_limit_bytes=cfg.vmem_limit),
        )(view)

        # Pass 2: elementwise centering; the (num_cores,1,1) partials stay
        # resident in VMEM, so the per-step mean is a <=2-element add.
        out3 = pl.pallas_call(
            functools.partial(_center_kernel, inv_n=inv_n),
            out_shape=jax.ShapeDtypeStruct(view.shape, orig_dtype),
            grid=(total_tiles,),
            in_specs=[
                pl.BlockSpec((num_cores, 1, 1), lambda i: (0, 0, 0)),
                pl.BlockSpec((block_rows, S2, S1), lambda i: (i, 0, 0)),
            ],
            out_specs=pl.BlockSpec((block_rows, S2, S1), lambda i: (i, 0, 0)),
            compiler_params=pltpu.CompilerParams(
                dimension_semantics=("parallel",),
                vmem_limit_bytes=cfg.vmem_limit),
        )(partials, view)

    return out3.reshape(orig_shape)


if __name__ == "__main__":
    fwd = jax.jit(centered_layer)
    k_small, k_big, k_vec = jax.random.split(jax.random.PRNGKey(0), 3)

    # Small NCHW input consistent with the module: [2, 4, 16, 16] (fused path).
    x = jax.random.normal(k_small, (2, 4, 16, 16), dtype=jnp.float32)
    y = jax.block_until_ready(fwd(x))
    ref = x - jnp.mean(x)
    assert y.shape == x.shape and y.dtype == x.dtype
    assert jnp.allclose(y, ref, atol=1e-5, rtol=1e-5), "fused path mismatch"

    # Larger, non-tile-aligned input (~22 MiB f32) to exercise the tiled
    # two-pass path: ragged leading-dim tiling, pl.when-gated mask, resident
    # scalar partials.
    x_big = jax.random.normal(k_big, (5, 23, 211, 241), dtype=jnp.float32)
    y_big = jax.block_until_ready(fwd(x_big))
    ref_big = x_big - jnp.mean(x_big)
    assert y_big.shape == x_big.shape and y_big.dtype == x_big.dtype
    assert jnp.allclose(y_big, ref_big, atol=1e-4, rtol=1e-4), \
        "tiled path mismatch"

    # Rank-1, non-128-aligned input (no host-side pad anywhere).
    x_vec = jax.random.normal(k_vec, (257,), dtype=jnp.float32)
    y_vec = jax.block_until_ready(fwd(x_vec))
    ref_vec = x_vec - jnp.mean(x_vec)
    assert jnp.allclose(y_vec, ref_vec, atol=1e-5, rtol=1e-5), \
        "rank-1 path mismatch"

    print("KERNEL_OK")
</pallas_src>

<mosaic_0001>
module attributes {stable_mosaic.version = 11 : i64} {
  func.func @_fused_kernel(%arg0: i32, %arg1: memref<8x16x16xf32, #tpu.memory_space<vmem>>, %arg2: memref<8x16x16xf32, #tpu.memory_space<vmem>>) attributes {dimension_semantics = [#tpu.dimension_semantics<arbitrary>], iteration_bounds = array<i64: 1>, scalar_prefetch = 0 : i64, scratch_operands = 0 : i64, tpu.core_type = #tpu.core_type<tc>, window_params = [{pipeline_mode = #tpu.pipeline_mode<synchronous>, transform_indices = @transform_0, window_bounds = array<i64: 8, 16, 16>}, {pipeline_mode = #tpu.pipeline_mode<synchronous>, transform_indices = @transform_1, window_bounds = array<i64: 8, 16, 16>}]} {
    %c0 = arith.constant 0 : index
    %c0_0 = arith.constant 0 : index
    %c0_1 = arith.constant 0 : index
    %0 = vector.load %arg1[%c0, %c0_0, %c0_1] : memref<8x16x16xf32, #tpu.memory_space<vmem>>, vector<8x16x16xf32>
    %1 = vector.shape_cast %0 : vector<8x16x16xf32> to vector<1x8x16x16xf32>
    %cst = arith.constant dense<0.000000e+00> : vector<1xf32>
    %2 = vector.multi_reduction <add>, %1, %cst [1, 2, 3] : vector<1x8x16x16xf32> to vector<1xf32>
    %3 = vector.shape_cast %2 : vector<1xf32> to vector<1x1x1x1xf32>
    %4 = vector.extract %3[0, 0, 0, 0] : f32 from vector<1x1x1x1xf32>
    %cst_2 = arith.constant 4.8828125E-4 : f32
    %5 = arith.mulf %4, %cst_2 : f32
    %6 = vector.broadcast %5 : f32 to vector<8x16x16xf32>
    %7 = arith.subf %0, %6 : vector<8x16x16xf32>
    %c0_3 = arith.constant 0 : index
    %c0_4 = arith.constant 0 : index
    %c0_5 = arith.constant 0 : index
    %8 = vector.load %arg2[%c0_3, %c0_4, %c0_5] : memref<8x16x16xf32, #tpu.memory_space<vmem>>, vector<8x16x16xf32>
    tpu.vector_store %arg2[%c0_3, %c0_4, %c0_5], %7 {strides = array<i32>} : memref<8x16x16xf32, #tpu.memory_space<vmem>>, vector<8x16x16xf32>,
    return
  }
  func.func @transform_0(%arg0: i32) -> (i32, i32, i32) {
    %c0_i32 = arith.constant 0 : i32
    %c0_i32_0 = arith.constant 0 : i32
    %c0_i32_1 = arith.constant 0 : i32
    %c0_i32_2 = arith.constant 0 : i32
    return %c0_i32, %c0_i32_0, %c0_i32_1 : i32, i32, i32
  }
  func.func @transform_1(%arg0: i32) -> (i32, i32, i32) {
    %c0_i32 = arith.constant 0 : i32
    %c0_i32_0 = arith.constant 0 : i32
    %c0_i32_1 = arith.constant 0 : i32
    %c0_i32_2 = arith.constant 0 : i32
    return %c0_i32, %c0_i32_0, %c0_i32_1 : i32, i32, i32
  }
}

</mosaic_0001>

<bundles_post_ra>
// kernel: centered_layer.1
= control target key start
LH: loop header
LB: loop body
LE: loop exit
PB: predicated region body
PF: predicated region fallthrough
CT: control target
= control target key end

     0   :  { %6 = vsyncpa [#allocation3], 0  ;;  %s283_s0 = inlined_call_operand.hbm [shape: f32[8,16,16], index: 0, kind: input, shape index: {}]   ;;  %s284_s1 = inlined_call_operand.hbm [shape: f32[8,16,16], index: 1, kind: output, shape index: {}]  }
   0x1   :  { %7 = vsyncpa [#allocation4], 0  ;;  %s12_s8 = sshll.u32 %s283_s0, 4  ;;  %s193_s9 = smov [#allocation2]   ;;  %s13_s8 = int_to_ptr.hbm [resolvable:$true] %s12_s8 }
   0x2   :  { %s14_s10 = sshll.u32 %s193_s9, 4  ;;  %s194_s11 = smov 128   ;;  %s15_s10 = int_to_ptr.vmem [resolvable:$true] %s14_s10 }
   0x3   :  { %s195_s12 = smov 8  }
   0x4   :  { %20 = dma.hbm_to_vmem [thread:$0]  %s13_s8, 2048, %s15_s10, [#allocation3], %s194_s11, %s194_s11, %s195_s12  }
   0x5   :  { %189 = dma.done.wait [#allocation3], 2048  }
   0x6   :  { %190 = vsyncadd [#allocation3], 4294965248  ;;  %vm41_vm0 = vcmask 130048   ;;  %v213_v0 = vld [vmem:[#allocation2] sm:$0xff]  ;;  %v215_v1 = vld [vmem:[#allocation2 + $0x8] sm:$0xff]  ;;  %s196_s14 = smov [#allocation5]  }
   0x7   :  { %v217_v2 = vld [vmem:[#allocation2 + $0x10] sm:$0xff]  ;;  %v219_v3 = vld [vmem:[#allocation2 + $0x18] sm:$0xff]  ;;  %v42_v4 = vsel %vm41_vm0, %v213_v0, 0.0  ;;  %v43_v5 = vsel %vm41_vm0, %v215_v1, 0.0  ;;  %v227_v7 = vld [vmem:[#allocation2 + $0x20] sm:$0xff]  ;;  %s120_s15 = sshll.u32 %s196_s14, 4  ;;  %s121_s15 = int_to_ptr.vmem [resolvable:$true] %s120_s15 }
   0x8   :  { %v45_v6 = vsel %vm41_vm0, %v217_v2, 0.0  ;;  %v44_v8 = vadd.f32 %v43_v5, %v42_v4  ;;  %v47_v9 = vsel %vm41_vm0, %v219_v3, 0.0  ;;  %v231_v10 = vld [vmem:[#allocation2 + $0x28] sm:$0xff]  ;;  %v49_v12 = vsel %vm41_vm0, %v227_v7, 0.0  ;;  %v235_v13 = vld [vmem:[#allocation2 + $0x30] sm:$0xff]  ;;  %v239_v16 = vld [vmem:[#allocation2 + $0x38] sm:$0xff] }
   0x9   :  { %v51_v15 = vsel %vm41_vm0, %v231_v10, 0.0  ;;  %v53_v18 = vsel %vm41_vm0, %v235_v13, 0.0  ;;  %v33_v19 = vld [vmem:[#allocation2 + $0x40] sm:$0xff]  ;;  %v55_v21 = vsel %vm41_vm0, %v239_v16, 0.0  ;;  %v34_v22 = vld [vmem:[#allocation2 + $0x48] sm:$0xff]  ;;  %v35_v25 = vld [vmem:[#allocation2 + $0x50] sm:$0xff] }
   0xa   :  { %v46_v11 = vadd.f32 %v45_v6, %v44_v8  ;;  %v57_v24 = vsel %vm41_vm0, %v33_v19, 0.0  ;;  %v59_v27 = vsel %vm41_vm0, %v34_v22, 0.0  ;;  %v36_v28 = vld [vmem:[#allocation2 + $0x58] sm:$0xff]  ;;  %v61_v30 = vsel %vm41_vm0, %v35_v25, 0.0  ;;  %v37_v31 = vld [vmem:[#allocation2 + $0x60] sm:$0xff]  ;;  %v38_v34 = vld [vmem:[#allocation2 + $0x68] sm:$0xff] }
   0xb   :  { %v63_v33 = vsel %vm41_vm0, %v36_v28, 0.0  ;;  %v65_v36 = vsel %vm41_vm0, %v37_v31, 0.0  ;;  %v39_v37 = vld [vmem:[#allocation2 + $0x70] sm:$0xff]  ;;  %v67_v39 = vsel %vm41_vm0, %v38_v34, 0.0  ;;  %v40_v40 = vld [vmem:[#allocation2 + $0x78] sm:$0xff]  ;;  %s122_s18 = sshll.u32 %s284_s1, 4  ;;  %s123_s18 = int_to_ptr.hbm [resolvable:$true] %s122_s18 }
   0xc   :  { %v48_v14 = vadd.f32 %v47_v9, %v46_v11  ;;  %v69_v42 = vsel %vm41_vm0, %v39_v37, 0.0  ;;  %v71_v44 = vsel %vm41_vm0, %v40_v40, 0.0 }
   0xe   :  { %v50_v17 = vadd.f32 %v49_v12, %v48_v14 }
  0x10   :  { %v52_v20 = vadd.f32 %v51_v15, %v50_v17 }
  0x12   :  { %v54_v23 = vadd.f32 %v53_v18, %v52_v20 }
  0x14   :  { %v56_v26 = vadd.f32 %v55_v21, %v54_v23 }
  0x16   :  { %v58_v29 = vadd.f32 %v57_v24, %v56_v26 }
  0x18   :  { %v60_v32 = vadd.f32 %v59_v27, %v58_v29 }
  0x1a   :  { %v62_v35 = vadd.f32 %v61_v30, %v60_v32 }
  0x1c   :  { %v64_v38 = vadd.f32 %v63_v33, %v62_v35 }
  0x1e   :  { %v66_v41 = vadd.f32 %v65_v36, %v64_v38 }
  0x20   :  { %v68_v43 = vadd.f32 %v67_v39, %v66_v41 }
  0x22   :  { %v70_v45 = vadd.f32 %v69_v42, %v68_v43 }
  0x24   :  { %v72_v46 = vadd.f32 %v71_v44, %v70_v45 }
  0x26   :  { %73 = vadd.xlane.f32.xlu0 %v72_v46 }
  0x99   :  { %v74_v47 = vpop.xlane.xlu0 %73 }
  0x9a   :  { %v75_v48 = vrot.slane %v74_v47, 4 }
  0x9c   :  { %v76_v49 = vadd.f32 %v75_v48, %v74_v47 }
  0x9e   :  { %v77_v50 = vrot.slane %v76_v49, 2 }
  0xa0   :  { %v78_v51 = vadd.f32 %v77_v50, %v76_v49 }
  0xa2   :  { %v79_v52 = vrot.slane %v78_v51, 1 }
  0xa4   :  { %v80_v53 = vadd.f32 %v79_v52, %v78_v51 }
  0xa6   :  { %135 = vpush %v80_v53 }
  0xd7   :  { %s136_s0 = spop %135 }
  0xd8   :  { %s82_s13 = smul.f32 0.00048828125, %s136_s0 }
  0xda   :  { %v83_v54 = vstv %s82_s13 }
  0xdb   :  { %v84_v55 = vsub.f32 %v213_v0, %v83_v54  ;;  %v85_v56 = vsub.f32 %v215_v1, %v83_v54  ;;  %v86_v57 = vsub.f32 %v217_v2, %v83_v54  ;;  %v87_v58 = vsub.f32 %v219_v3, %v83_v54 }
  0xdc   :  { %v88_v59 = vsub.f32 %v227_v7, %v83_v54  ;;  %v89_v60 = vsub.f32 %v231_v10, %v83_v54  ;;  %v90_v61 = vsub.f32 %v235_v13, %v83_v54  ;;  %v91_v62 = vsub.f32 %v239_v16, %v83_v54 }
  0xdd   :  { %100 = vst.msk [vmem:[#allocation5] sm:$0xff] %vm41_vm0, %v84_v55  ;;  %v92_v63 = vsub.f32 %v33_v19, %v83_v54  ;;  %v93_v0 = vsub.f32 %v34_v22, %v83_v54  ;;  %v94_v1 = vsub.f32 %v35_v25, %v83_v54  ;;  %v95_v2 = vsub.f32 %v36_v28, %v83_v54 }
  0xde   :  { %101 = vst.msk [vmem:[#allocation5 + $0x8] sm:$0xff] %vm41_vm0, %v85_v56  ;;  %v96_v3 = vsub.f32 %v37_v31, %v83_v54  ;;  %v97_v4 = vsub.f32 %v38_v34, %v83_v54  ;;  %v98_v5 = vsub.f32 %v39_v37, %v83_v54  ;;  %v99_v6 = vsub.f32 %v40_v40, %v83_v54 }
  0xdf   :  { %102 = vst.msk [vmem:[#allocation5 + $0x10] sm:$0xff] %vm41_vm0, %v86_v57 }
  0xe0   :  { %103 = vst.msk [vmem:[#allocation5 + $0x18] sm:$0xff] %vm41_vm0, %v87_v58 }
  0xe1   :  { %104 = vst.msk [vmem:[#allocation5 + $0x20] sm:$0xff] %vm41_vm0, %v88_v59 }
  0xe2   :  { %105 = vst.msk [vmem:[#allocation5 + $0x28] sm:$0xff] %vm41_vm0, %v89_v60 }
  0xe3   :  { %106 = vst.msk [vmem:[#allocation5 + $0x30] sm:$0xff] %vm41_vm0, %v90_v61 }
  0xe4   :  { %107 = vst.msk [vmem:[#allocation5 + $0x38] sm:$0xff] %vm41_vm0, %v91_v62 }
  0xe5   :  { %108 = vst.msk [vmem:[#allocation5 + $0x40] sm:$0xff] %vm41_vm0, %v92_v63 }
  0xe6   :  { %109 = vst.msk [vmem:[#allocation5 + $0x48] sm:$0xff] %vm41_vm0, %v93_v0 }
  0xe7   :  { %110 = vst.msk [vmem:[#allocation5 + $0x50] sm:$0xff] %vm41_vm0, %v94_v1 }
  0xe8   :  { %111 = vst.msk [vmem:[#allocation5 + $0x58] sm:$0xff] %vm41_vm0, %v95_v2 }
  0xe9   :  { %112 = vst.msk [vmem:[#allocation5 + $0x60] sm:$0xff] %vm41_vm0, %v96_v3 }
  0xea   :  { %113 = vst.msk [vmem:[#allocation5 + $0x68] sm:$0xff] %vm41_vm0, %v97_v4 }
  0xeb   :  { %114 = vst.msk [vmem:[#allocation5 + $0x70] sm:$0xff] %vm41_vm0, %v98_v5 }
  0xec   :  { %115 = vst.msk [vmem:[#allocation5 + $0x78] sm:$0xff] %vm41_vm0, %v99_v6 }
  0xed   :  { %128 = dma.vmem_to_hbm [thread:$0]  %s121_s15, 2048, %s123_s18, [#allocation4], %s194_s11, %s194_s11, %s195_s12  }
  0xee   :  { %191 = dma.done.wait [#allocation4], 2048  }
  0xef   :  { %192 = vsyncadd [#allocation4], 4294965248 }
  0xf0   :  { %133 = vsyncpa [#allocation3], 1 }
  0xf1   :  { %134 = vsyncpa [#allocation4], 1 }

</bundles_post_ra>
